<compile_context>
chip_gen: v6e
topology: v6e:2x2x1
jax: 0.10.0
libtpu: 0.0.40
codegen_flags: <defaults>
</compile_context>

<pallas_src>
import functools

import jax
import jax.numpy as jnp
from jax.experimental import pallas as pl
from jax.experimental.pallas import tpu as pltpu

# float32 keeps the exact MXU f32 path so the result matches an f32 reference
# tightly; flip to jnp.bfloat16 on v6e/v7x for full-rate MXU (loosen tolerance).
_MATMUL_DTYPE = jnp.float32


def _conv_block_kernel(x_ref, band1_ref, b1_ref, g1_ref, bt1_ref,
                       band2_ref, b2_ref, g2_ref, bt2_ref, proj_ref,
                       o_ref,
                       xpad_ref, p1_ref, hpad_ref, p2_ref,
                       *, N, H, W, C1, C2, eps):
    """Fused (conv3x3 + BN(batch stats) + ReLU) x 2 in a lane-packed layout.

    x_ref    : (N, H, W*C1)            input, channels packed into lanes
    band1/2  : (3*W*Cin, W*C2)         banded conv weights (taps folded in)
    b/g/bt   : (1, W*C2)               bias / gamma / beta, channel-tiled
    proj_ref : (W*C2, W*C2)            block-identity: per-channel sum/broadcast
    o_ref    : (N*H, W*C2)             lane-dense output
    xpad/hpad: (N, H+2, W*C)           H-padded activations (VMEM scratch)
    p1/p2    : (N*H, 3*W*C)            im2col matrices (VMEM scratch)
    """
    NH = N * H
    inv_cnt = 1.0 / float(N * H * W)
    proj = proj_ref[...]  # (W*C2, W*C2)

    def stage(pad_ref, p_ref, c_in, band_ref, b_ref, g_ref, bt_ref):
        k = W * c_in
        # im2col: 3 row-shifted views of the H-padded activations, packed along
        # the contraction axis in VMEM -> a single MXU matmul per stage.
        for dh in range(3):
            p_ref[:, dh * k:(dh + 1) * k] = pad_ref[:, dh:dh + H, :].reshape(NH, k)
        y = jnp.dot(p_ref[...].astype(_MATMUL_DTYPE),
                    band_ref[...].astype(_MATMUL_DTYPE),
                    preferred_element_type=jnp.float32)            # (N*H, W*C2)
        y = y + b_ref[...]
        # BatchNorm2d, training-mode batch stats over (N, H, W) per channel.
        # proj sums the W copies of each channel and broadcasts the per-channel
        # statistic back to every (w, c) lane.
        mean = jnp.dot(jnp.sum(y, axis=0, keepdims=True), proj,
                       preferred_element_type=jnp.float32) * inv_cnt
        d = y - mean
        var = jnp.dot(jnp.sum(d * d, axis=0, keepdims=True), proj,
                      preferred_element_type=jnp.float32) * inv_cnt
        y = d * jax.lax.rsqrt(var + eps) * g_ref[...] + bt_ref[...]
        return jnp.maximum(y, 0.0)                                  # (N*H, W*C2)

    # ---- stage 1: zero 'same' halo written in-kernel into VMEM scratch ----
    xpad_ref[...] = jnp.zeros_like(xpad_ref)
    xpad_ref[:, 1:H + 1, :] = x_ref[...].astype(jnp.float32)
    h = stage(xpad_ref, p1_ref, C1, band1_ref, b1_ref, g1_ref, bt1_ref)

    # ---- stage 2: intermediate stays in VMEM (no HBM round trip) ----
    hpad_ref[...] = jnp.zeros_like(hpad_ref)
    hpad_ref[:, 1:H + 1, :] = h.reshape(N, H, W * C2)
    h = stage(hpad_ref, p2_ref, C2, band2_ref, b2_ref, g2_ref, bt2_ref)

    # Lane-dense store: last dim = W*C2 (=128 here) -> unmasked vector stores.
    o_ref[...] = h.astype(o_ref.dtype)


def _make_band(w_hwio, W):
    """Fold 3x3 HWIO weights + horizontal 'same'-padding into a banded matrix.

    Returns B of shape (3*W*Cin, W*Cout) such that, with the im2col matrix
    P[(n*H+h), dh*W*Cin + b*Cin + ci] = xpadH[n, h+dh, b, ci] (H-padded only),
    P @ B equals the 3x3 'same' convolution in the (N*H, W*Cout) layout.
    """
    _, _, cin, cout = w_hwio.shape
    b_idx = jnp.arange(W)[:, None]          # input column position
    w_idx = jnp.arange(W)[None, :]          # output column position
    dw = b_idx - w_idx + 1                  # horizontal tap index
    mask = ((dw >= 0) & (dw <= 2)).astype(w_hwio.dtype)
    dw_c = jnp.clip(dw, 0, 2)
    blocks = []
    for dh in range(3):
        blk = w_hwio[dh][dw_c] * mask[:, :, None, None]   # (W, W, Cin, Cout)
        blk = blk.transpose(0, 2, 1, 3)                   # (W, Cin, W, Cout)
        blocks.append(blk.reshape(W * cin, W * cout))
    return jnp.concatenate(blocks, axis=0).astype(jnp.float32)   # (3*W*Cin, W*Cout)


def conv_block_forward(x_nchw, params, *, eps=1e-5):
    """Full ConvBlock forward. Input/output are NCHW (PyTorch convention)."""
    N, C1, H, W = x_nchw.shape
    C2 = params["w1"].shape[-1]
    WC2 = W * C2

    # NCHW -> lane-packed (N, H, W*C1) activations (layout plumbing only).
    x3 = jnp.transpose(x_nchw, (0, 2, 3, 1)).reshape(N, H, W * C1).astype(jnp.float32)

    band1 = _make_band(params["w1"], W)                      # (3*W*C1, W*C2)
    band2 = _make_band(params["w2"], W)                      # (3*W*C2, W*C2)
    tile_c = lambda v: jnp.tile(v.astype(jnp.float32), W).reshape(1, WC2)
    proj = jnp.tile(jnp.eye(C2, dtype=jnp.float32), (W, W))  # (W*C2, W*C2)

    kernel = functools.partial(_conv_block_kernel,
                               N=N, H=H, W=W, C1=C1, C2=C2, eps=eps)

    out2d = pl.pallas_call(
        kernel,
        out_shape=jax.ShapeDtypeStruct((N * H, WC2), x_nchw.dtype),
        grid=(1,),
        in_specs=[
            # Every block is the full array, so each index_map returns the
            # all-zeros *block* index.
            pl.BlockSpec((N, H, W * C1), lambda i: (0, 0, 0)),
            pl.BlockSpec(band1.shape, lambda i: (0, 0)),
            pl.BlockSpec((1, WC2), lambda i: (0, 0)),
            pl.BlockSpec((1, WC2), lambda i: (0, 0)),
            pl.BlockSpec((1, WC2), lambda i: (0, 0)),
            pl.BlockSpec(band2.shape, lambda i: (0, 0)),
            pl.BlockSpec((1, WC2), lambda i: (0, 0)),
            pl.BlockSpec((1, WC2), lambda i: (0, 0)),
            pl.BlockSpec((1, WC2), lambda i: (0, 0)),
            pl.BlockSpec((WC2, WC2), lambda i: (0, 0)),
        ],
        out_specs=pl.BlockSpec((N * H, WC2), lambda i: (0, 0)),
        scratch_shapes=[
            pltpu.VMEM((N, H + 2, W * C1), jnp.float32),      # H-padded stage-1 input
            pltpu.VMEM((N * H, 3 * W * C1), jnp.float32),     # stage-1 im2col
            pltpu.VMEM((N, H + 2, W * C2), jnp.float32),      # H-padded stage-2 input
            pltpu.VMEM((N * H, 3 * W * C2), jnp.float32),     # stage-2 im2col
        ],
        compiler_params=pltpu.CompilerParams(
            dimension_semantics=("arbitrary",)),
    )(x3, band1, tile_c(params["b1"]), tile_c(params["g1"]), tile_c(params["beta1"]),
      band2, tile_c(params["b2"]), tile_c(params["g2"]), tile_c(params["beta2"]), proj)

    # (N*H, W*C2) -> NCHW
    return out2d.reshape(N, H, W, C2).transpose(0, 3, 1, 2)


# ------------------------- pure-JAX reference -------------------------------
def _ref_stage(x_nhwc, w, b, g, bt, eps=1e-5):
    y = jax.lax.conv_general_dilated(
        x_nhwc, w, window_strides=(1, 1), padding="SAME",
        dimension_numbers=("NHWC", "HWIO", "NHWC"))
    y = y + b.reshape(1, 1, 1, -1)
    mean = y.mean(axis=(0, 1, 2), keepdims=True)
    var = ((y - mean) ** 2).mean(axis=(0, 1, 2), keepdims=True)
    y = (y - mean) * jax.lax.rsqrt(var + eps) * g.reshape(1, 1, 1, -1) + bt.reshape(1, 1, 1, -1)
    return jnp.maximum(y, 0.0)


def conv_block_reference(x_nchw, params):
    x = jnp.transpose(x_nchw, (0, 2, 3, 1))
    h = _ref_stage(x, params["w1"], params["b1"], params["g1"], params["beta1"])
    h = _ref_stage(h, params["w2"], params["b2"], params["g2"], params["beta2"])
    return jnp.transpose(h, (0, 3, 1, 2))


# ------------------------------- main ----------------------------------------
if __name__ == "__main__":
    batch, in_channels, out_channels, H, W = 2, 4, 8, 16, 16

    key = jax.random.PRNGKey(0)
    k = jax.random.split(key, 7)

    # Deterministic synthetic parameters (shapes match nn.Conv2d / nn.BatchNorm2d).
    params = {
        "w1": 0.1 * jax.random.normal(k[0], (3, 3, in_channels, out_channels), jnp.float32),
        "b1": 0.1 * jax.random.normal(k[1], (out_channels,), jnp.float32),
        "g1": 1.0 + 0.1 * jax.random.normal(k[2], (out_channels,), jnp.float32),
        "beta1": 0.1 * jax.random.normal(k[3], (out_channels,), jnp.float32),
        "w2": 0.1 * jax.random.normal(k[4], (3, 3, out_channels, out_channels), jnp.float32),
        "b2": 0.1 * jax.random.normal(k[5], (out_channels,), jnp.float32),
        "g2": jnp.ones((out_channels,), jnp.float32),
        "beta2": jnp.zeros((out_channels,), jnp.float32),
    }

    x = jax.random.normal(k[6], (batch, in_channels, H, W), jnp.float32)  # NCHW

    out = jax.block_until_ready(conv_block_forward(x, params))
    ref = jax.block_until_ready(conv_block_reference(x, params))

    assert out.shape == (batch, out_channels, H, W), out.shape
    if not jnp.allclose(out, ref, atol=5e-4, rtol=5e-4):
        raise AssertionError("Pallas ConvBlock output mismatch vs JAX reference")

    print("KERNEL_OK")
</pallas_src>

<mosaic_0001>
module attributes {stable_mosaic.version = 11 : i64} {
  func.func @_conv_block_kernel(%arg0: i32, %arg1: memref<2x16x64xf32, #tpu.memory_space<vmem>>, %arg2: memref<192x128xf32, #tpu.memory_space<vmem>>, %arg3: memref<1x128xf32, #tpu.memory_space<vmem>>, %arg4: memref<1x128xf32, #tpu.memory_space<vmem>>, %arg5: memref<1x128xf32, #tpu.memory_space<vmem>>, %arg6: memref<384x128xf32, #tpu.memory_space<vmem>>, %arg7: memref<1x128xf32, #tpu.memory_space<vmem>>, %arg8: memref<1x128xf32, #tpu.memory_space<vmem>>, %arg9: memref<1x128xf32, #tpu.memory_space<vmem>>, %arg10: memref<128x128xf32, #tpu.memory_space<vmem>>, %arg11: memref<32x128xf32, #tpu.memory_space<vmem>>, %arg12: memref<2x18x64xf32, #tpu.memory_space<vmem>>, %arg13: memref<32x192xf32, #tpu.memory_space<vmem>>, %arg14: memref<2x18x128xf32, #tpu.memory_space<vmem>>, %arg15: memref<32x384xf32, #tpu.memory_space<vmem>>) attributes {dimension_semantics = [#tpu.dimension_semantics<arbitrary>], iteration_bounds = array<i64: 1>, scalar_prefetch = 0 : i64, scratch_operands = 4 : i64, tpu.core_type = #tpu.core_type<tc>, window_params = [{pipeline_mode = #tpu.pipeline_mode<synchronous>, transform_indices = @transform_0, window_bounds = array<i64: 2, 16, 64>}, {pipeline_mode = #tpu.pipeline_mode<synchronous>, transform_indices = @transform_1, window_bounds = array<i64: 192, 128>}, {pipeline_mode = #tpu.pipeline_mode<synchronous>, transform_indices = @transform_2, window_bounds = array<i64: 1, 128>}, {pipeline_mode = #tpu.pipeline_mode<synchronous>, transform_indices = @transform_3, window_bounds = array<i64: 1, 128>}, {pipeline_mode = #tpu.pipeline_mode<synchronous>, transform_indices = @transform_4, window_bounds = array<i64: 1, 128>}, {pipeline_mode = #tpu.pipeline_mode<synchronous>, transform_indices = @transform_5, window_bounds = array<i64: 384, 128>}, {pipeline_mode = #tpu.pipeline_mode<synchronous>, transform_indices = @transform_6, window_bounds = array<i64: 1, 128>}, {pipeline_mode = #tpu.pipeline_mode<synchronous>, transform_indices = @transform_7, window_bounds = array<i64: 1, 128>}, {pipeline_mode = #tpu.pipeline_mode<synchronous>, transform_indices = @transform_8, window_bounds = array<i64: 1, 128>}, {pipeline_mode = #tpu.pipeline_mode<synchronous>, transform_indices = @transform_9, window_bounds = array<i64: 128, 128>}, {pipeline_mode = #tpu.pipeline_mode<synchronous>, transform_indices = @transform_10, window_bounds = array<i64: 32, 128>}]} {
    %c0 = arith.constant 0 : index
    %c0_0 = arith.constant 0 : index
    %0 = vector.load %arg10[%c0, %c0_0] : memref<128x128xf32, #tpu.memory_space<vmem>>, vector<128x128xf32>
    %cst = arith.constant 0.000000e+00 : f32
    %1 = vector.broadcast %cst : f32 to vector<2x18x64xf32>
    %c0_1 = arith.constant 0 : index
    %c0_2 = arith.constant 0 : index
    %c0_3 = arith.constant 0 : index
    %2 = vector.load %arg12[%c0_1, %c0_2, %c0_3] : memref<2x18x64xf32, #tpu.memory_space<vmem>>, vector<2x18x64xf32>
    tpu.vector_store %arg12[%c0_1, %c0_2, %c0_3], %1 {strides = array<i32>} : memref<2x18x64xf32, #tpu.memory_space<vmem>>, vector<2x18x64xf32>,
    %c0_4 = arith.constant 0 : index
    %c0_5 = arith.constant 0 : index
    %c0_6 = arith.constant 0 : index
    %3 = vector.load %arg1[%c0_4, %c0_5, %c0_6] : memref<2x16x64xf32, #tpu.memory_space<vmem>>, vector<2x16x64xf32>
    %c0_7 = arith.constant 0 : index
    %c1 = arith.constant 1 : index
    %c0_8 = arith.constant 0 : index
    %4 = vector.load %arg12[%c0_7, %c1, %c0_8] : memref<2x18x64xf32, #tpu.memory_space<vmem>>, vector<2x16x64xf32>
    tpu.vector_store %arg12[%c0_7, %c1, %c0_8], %3 {strides = array<i32>} : memref<2x18x64xf32, #tpu.memory_space<vmem>>, vector<2x16x64xf32>,
    %c0_9 = arith.constant 0 : index
    %c0_10 = arith.constant 0 : index
    %c0_11 = arith.constant 0 : index
    %5 = vector.load %arg12[%c0_9, %c0_10, %c0_11] : memref<2x18x64xf32, #tpu.memory_space<vmem>>, vector<2x16x64xf32>
    %6 = vector.shape_cast %5 : vector<2x16x64xf32> to vector<32x64xf32>
    %c0_12 = arith.constant 0 : index
    %c0_13 = arith.constant 0 : index
    %7 = vector.load %arg13[%c0_12, %c0_13] : memref<32x192xf32, #tpu.memory_space<vmem>>, vector<32x64xf32>
    tpu.vector_store %arg13[%c0_12, %c0_13], %6 {strides = array<i32>} : memref<32x192xf32, #tpu.memory_space<vmem>>, vector<32x64xf32>,
    %c0_14 = arith.constant 0 : index
    %c1_15 = arith.constant 1 : index
    %c0_16 = arith.constant 0 : index
    %8 = vector.load %arg12[%c0_14, %c1_15, %c0_16] : memref<2x18x64xf32, #tpu.memory_space<vmem>>, vector<2x16x64xf32>
    %9 = vector.shape_cast %8 : vector<2x16x64xf32> to vector<32x64xf32>
    %c0_17 = arith.constant 0 : index
    %c64 = arith.constant 64 : index
    %10 = vector.load %arg13[%c0_17, %c64] : memref<32x192xf32, #tpu.memory_space<vmem>>, vector<32x64xf32>
    tpu.vector_store %arg13[%c0_17, %c64], %9 {strides = array<i32>} : memref<32x192xf32, #tpu.memory_space<vmem>>, vector<32x64xf32>,
    %c0_18 = arith.constant 0 : index
    %c2 = arith.constant 2 : index
    %c0_19 = arith.constant 0 : index
    %11 = vector.load %arg12[%c0_18, %c2, %c0_19] : memref<2x18x64xf32, #tpu.memory_space<vmem>>, vector<2x16x64xf32>
    %12 = vector.shape_cast %11 : vector<2x16x64xf32> to vector<32x64xf32>
    %c0_20 = arith.constant 0 : index
    %c128 = arith.constant 128 : index
    %13 = vector.load %arg13[%c0_20, %c128] : memref<32x192xf32, #tpu.memory_space<vmem>>, vector<32x64xf32>
    tpu.vector_store %arg13[%c0_20, %c128], %12 {strides = array<i32>} : memref<32x192xf32, #tpu.memory_space<vmem>>, vector<32x64xf32>,
    %c0_21 = arith.constant 0 : index
    %c0_22 = arith.constant 0 : index
    %14 = vector.load %arg13[%c0_21, %c0_22] : memref<32x192xf32, #tpu.memory_space<vmem>>, vector<32x192xf32>
    %c0_23 = arith.constant 0 : index
    %c0_24 = arith.constant 0 : index
    %15 = vector.load %arg2[%c0_23, %c0_24] : memref<192x128xf32, #tpu.memory_space<vmem>>, vector<192x128xf32>
    %cst_25 = arith.constant dense<0.000000e+00> : vector<32x128xf32>
    %16 = tpu.matmul %14, %15, %cst_25 {dimension_numbers = #tpu.dot_dimension_numbers<[1], [0], [0], [1], [0, 0, 1, 1], [], []>} : vector<32x192xf32>, vector<192x128xf32>, vector<32x128xf32> -> vector<32x128xf32>
    %c0_26 = arith.constant 0 : index
    %c0_27 = arith.constant 0 : index
    %17 = vector.load %arg3[%c0_26, %c0_27] : memref<1x128xf32, #tpu.memory_space<vmem>>, vector<1x128xf32>
    %18 = vector.broadcast %17 : vector<1x128xf32> to vector<32x128xf32>
    %19 = arith.addf %16, %18 : vector<32x128xf32>
    %cst_28 = arith.constant dense<0.000000e+00> : vector<128xf32>
    %20 = vector.multi_reduction <add>, %19, %cst_28 [0] : vector<32x128xf32> to vector<128xf32>
    %21 = vector.shape_cast %20 : vector<128xf32> to vector<1x128xf32>
    %cst_29 = arith.constant dense<0.000000e+00> : vector<1x128xf32>
    %22 = tpu.matmul %21, %0, %cst_29 {dimension_numbers = #tpu.dot_dimension_numbers<[1], [0], [0], [1], [0, 0, 1, 1], [], []>} : vector<1x128xf32>, vector<128x128xf32>, vector<1x128xf32> -> vector<1x128xf32>
    %cst_30 = arith.constant 0.001953125 : f32
    %23 = vector.broadcast %cst_30 : f32 to vector<1x128xf32>
    %24 = arith.mulf %22, %23 : vector<1x128xf32>
    %25 = vector.broadcast %24 : vector<1x128xf32> to vector<32x128xf32>
    %26 = arith.subf %19, %25 : vector<32x128xf32>
    %27 = arith.mulf %26, %26 : vector<32x128xf32>
    %cst_31 = arith.constant dense<0.000000e+00> : vector<128xf32>
    %28 = vector.multi_reduction <add>, %27, %cst_31 [0] : vector<32x128xf32> to vector<128xf32>
    %29 = vector.shape_cast %28 : vector<128xf32> to vector<1x128xf32>
    %cst_32 = arith.constant dense<0.000000e+00> : vector<1x128xf32>
    %30 = tpu.matmul %29, %0, %cst_32 {dimension_numbers = #tpu.dot_dimension_numbers<[1], [0], [0], [1], [0, 0, 1, 1], [], []>} : vector<1x128xf32>, vector<128x128xf32>, vector<1x128xf32> -> vector<1x128xf32>
    %cst_33 = arith.constant 0.001953125 : f32
    %31 = vector.broadcast %cst_33 : f32 to vector<1x128xf32>
    %32 = arith.mulf %30, %31 : vector<1x128xf32>
    %cst_34 = arith.constant 9.99999974E-6 : f32
    %33 = vector.broadcast %cst_34 : f32 to vector<1x128xf32>
    %34 = arith.addf %32, %33 : vector<1x128xf32>
    %35 = math.rsqrt %34 : vector<1x128xf32>
    %36 = vector.broadcast %35 : vector<1x128xf32> to vector<32x128xf32>
    %37 = arith.mulf %26, %36 : vector<32x128xf32>
    %c0_35 = arith.constant 0 : index
    %c0_36 = arith.constant 0 : index
    %38 = vector.load %arg4[%c0_35, %c0_36] : memref<1x128xf32, #tpu.memory_space<vmem>>, vector<1x128xf32>
    %39 = vector.broadcast %38 : vector<1x128xf32> to vector<32x128xf32>
    %40 = arith.mulf %37, %39 : vector<32x128xf32>
    %c0_37 = arith.constant 0 : index
    %c0_38 = arith.constant 0 : index
    %41 = vector.load %arg5[%c0_37, %c0_38] : memref<1x128xf32, #tpu.memory_space<vmem>>, vector<1x128xf32>
    %42 = vector.broadcast %41 : vector<1x128xf32> to vector<32x128xf32>
    %43 = arith.addf %40, %42 : vector<32x128xf32>
    %cst_39 = arith.constant 0.000000e+00 : f32
    %44 = vector.broadcast %cst_39 : f32 to vector<32x128xf32>
    %45 = arith.maximumf %43, %44 : vector<32x128xf32>
    %cst_40 = arith.constant 0.000000e+00 : f32
    %46 = vector.broadcast %cst_40 : f32 to vector<2x18x128xf32>
    %c0_41 = arith.constant 0 : index
    %c0_42 = arith.constant 0 : index
    %c0_43 = arith.constant 0 : index
    %47 = vector.load %arg14[%c0_41, %c0_42, %c0_43] : memref<2x18x128xf32, #tpu.memory_space<vmem>>, vector<2x18x128xf32>
    tpu.vector_store %arg14[%c0_41, %c0_42, %c0_43], %46 {strides = array<i32>} : memref<2x18x128xf32, #tpu.memory_space<vmem>>, vector<2x18x128xf32>,
    %48 = vector.shape_cast %45 : vector<32x128xf32> to vector<2x16x128xf32>
    %c0_44 = arith.constant 0 : index
    %c1_45 = arith.constant 1 : index
    %c0_46 = arith.constant 0 : index
    %49 = vector.load %arg14[%c0_44, %c1_45, %c0_46] : memref<2x18x128xf32, #tpu.memory_space<vmem>>, vector<2x16x128xf32>
    tpu.vector_store %arg14[%c0_44, %c1_45, %c0_46], %48 {strides = array<i32>} : memref<2x18x128xf32, #tpu.memory_space<vmem>>, vector<2x16x128xf32>,
    %c0_47 = arith.constant 0 : index
    %c0_48 = arith.constant 0 : index
    %c0_49 = arith.constant 0 : index
    %50 = vector.load %arg14[%c0_47, %c0_48, %c0_49] : memref<2x18x128xf32, #tpu.memory_space<vmem>>, vector<2x16x128xf32>
    %51 = vector.shape_cast %50 : vector<2x16x128xf32> to vector<32x128xf32>
    %c0_50 = arith.constant 0 : index
    %c0_51 = arith.constant 0 : index
    %52 = vector.load %arg15[%c0_50, %c0_51] : memref<32x384xf32, #tpu.memory_space<vmem>>, vector<32x128xf32>
    tpu.vector_store %arg15[%c0_50, %c0_51], %51 {strides = array<i32>} : memref<32x384xf32, #tpu.memory_space<vmem>>, vector<32x128xf32>,
    %c0_52 = arith.constant 0 : index
    %c1_53 = arith.constant 1 : index
    %c0_54 = arith.constant 0 : index
    %53 = vector.load %arg14[%c0_52, %c1_53, %c0_54] : memref<2x18x128xf32, #tpu.memory_space<vmem>>, vector<2x16x128xf32>
    %54 = vector.shape_cast %53 : vector<2x16x128xf32> to vector<32x128xf32>
    %c0_55 = arith.constant 0 : index
    %c128_56 = arith.constant 128 : index
    %55 = vector.load %arg15[%c0_55, %c128_56] : memref<32x384xf32, #tpu.memory_space<vmem>>, vector<32x128xf32>
    tpu.vector_store %arg15[%c0_55, %c128_56], %54 {strides = array<i32>} : memref<32x384xf32, #tpu.memory_space<vmem>>, vector<32x128xf32>,
    %c0_57 = arith.constant 0 : index
    %c2_58 = arith.constant 2 : index
    %c0_59 = arith.constant 0 : index
    %56 = vector.load %arg14[%c0_57, %c2_58, %c0_59] : memref<2x18x128xf32, #tpu.memory_space<vmem>>, vector<2x16x128xf32>
    %57 = vector.shape_cast %56 : vector<2x16x128xf32> to vector<32x128xf32>
    %c0_60 = arith.constant 0 : index
    %c256 = arith.constant 256 : index
    %58 = vector.load %arg15[%c0_60, %c256] : memref<32x384xf32, #tpu.memory_space<vmem>>, vector<32x128xf32>
    tpu.vector_store %arg15[%c0_60, %c256], %57 {strides = array<i32>} : memref<32x384xf32, #tpu.memory_space<vmem>>, vector<32x128xf32>,
    %c0_61 = arith.constant 0 : index
    %c0_62 = arith.constant 0 : index
    %59 = vector.load %arg15[%c0_61, %c0_62] : memref<32x384xf32, #tpu.memory_space<vmem>>, vector<32x384xf32>
    %c0_63 = arith.constant 0 : index
    %c0_64 = arith.constant 0 : index
    %60 = vector.load %arg6[%c0_63, %c0_64] : memref<384x128xf32, #tpu.memory_space<vmem>>, vector<384x128xf32>
    %cst_65 = arith.constant dense<0.000000e+00> : vector<32x128xf32>
    %61 = tpu.matmul %59, %60, %cst_65 {dimension_numbers = #tpu.dot_dimension_numbers<[1], [0], [0], [1], [0, 0, 1, 1], [], []>} : vector<32x384xf32>, vector<384x128xf32>, vector<32x128xf32> -> vector<32x128xf32>
    %c0_66 = arith.constant 0 : index
    %c0_67 = arith.constant 0 : index
    %62 = vector.load %arg7[%c0_66, %c0_67] : memref<1x128xf32, #tpu.memory_space<vmem>>, vector<1x128xf32>
    %63 = vector.broadcast %62 : vector<1x128xf32> to vector<32x128xf32>
    %64 = arith.addf %61, %63 : vector<32x128xf32>
    %cst_68 = arith.constant dense<0.000000e+00> : vector<128xf32>
    %65 = vector.multi_reduction <add>, %64, %cst_68 [0] : vector<32x128xf32> to vector<128xf32>
    %66 = vector.shape_cast %65 : vector<128xf32> to vector<1x128xf32>
    %cst_69 = arith.constant dense<0.000000e+00> : vector<1x128xf32>
    %67 = tpu.matmul %66, %0, %cst_69 {dimension_numbers = #tpu.dot_dimension_numbers<[1], [0], [0], [1], [0, 0, 1, 1], [], []>} : vector<1x128xf32>, vector<128x128xf32>, vector<1x128xf32> -> vector<1x128xf32>
    %cst_70 = arith.constant 0.001953125 : f32
    %68 = vector.broadcast %cst_70 : f32 to vector<1x128xf32>
    %69 = arith.mulf %67, %68 : vector<1x128xf32>
    %70 = vector.broadcast %69 : vector<1x128xf32> to vector<32x128xf32>
    %71 = arith.subf %64, %70 : vector<32x128xf32>
    %72 = arith.mulf %71, %71 : vector<32x128xf32>
    %cst_71 = arith.constant dense<0.000000e+00> : vector<128xf32>
    %73 = vector.multi_reduction <add>, %72, %cst_71 [0] : vector<32x128xf32> to vector<128xf32>
    %74 = vector.shape_cast %73 : vector<128xf32> to vector<1x128xf32>
    %cst_72 = arith.constant dense<0.000000e+00> : vector<1x128xf32>
    %75 = tpu.matmul %74, %0, %cst_72 {dimension_numbers = #tpu.dot_dimension_numbers<[1], [0], [0], [1], [0, 0, 1, 1], [], []>} : vector<1x128xf32>, vector<128x128xf32>, vector<1x128xf32> -> vector<1x128xf32>
    %cst_73 = arith.constant 0.001953125 : f32
    %76 = vector.broadcast %cst_73 : f32 to vector<1x128xf32>
    %77 = arith.mulf %75, %76 : vector<1x128xf32>
    %cst_74 = arith.constant 9.99999974E-6 : f32
    %78 = vector.broadcast %cst_74 : f32 to vector<1x128xf32>
    %79 = arith.addf %77, %78 : vector<1x128xf32>
    %80 = math.rsqrt %79 : vector<1x128xf32>
    %81 = vector.broadcast %80 : vector<1x128xf32> to vector<32x128xf32>
    %82 = arith.mulf %71, %81 : vector<32x128xf32>
    %c0_75 = arith.constant 0 : index
    %c0_76 = arith.constant 0 : index
    %83 = vector.load %arg8[%c0_75, %c0_76] : memref<1x128xf32, #tpu.memory_space<vmem>>, vector<1x128xf32>
    %84 = vector.broadcast %83 : vector<1x128xf32> to vector<32x128xf32>
    %85 = arith.mulf %82, %84 : vector<32x128xf32>
    %c0_77 = arith.constant 0 : index
    %c0_78 = arith.constant 0 : index
    %86 = vector.load %arg9[%c0_77, %c0_78] : memref<1x128xf32, #tpu.memory_space<vmem>>, vector<1x128xf32>
    %87 = vector.broadcast %86 : vector<1x128xf32> to vector<32x128xf32>
    %88 = arith.addf %85, %87 : vector<32x128xf32>
    %cst_79 = arith.constant 0.000000e+00 : f32
    %89 = vector.broadcast %cst_79 : f32 to vector<32x128xf32>
    %90 = arith.maximumf %88, %89 : vector<32x128xf32>
    %c0_80 = arith.constant 0 : index
    %c0_81 = arith.constant 0 : index
    %91 = vector.load %arg11[%c0_80, %c0_81] : memref<32x128xf32, #tpu.memory_space<vmem>>, vector<32x128xf32>
    tpu.vector_store %arg11[%c0_80, %c0_81], %90 {strides = array<i32>} : memref<32x128xf32, #tpu.memory_space<vmem>>, vector<32x128xf32>,
    return
  }
  func.func @transform_0(%arg0: i32) -> (i32, i32, i32) {
    %c0_i32 = arith.constant 0 : i32
    %c0_i32_0 = arith.constant 0 : i32
    %c0_i32_1 = arith.constant 0 : i32
    %c0_i32_2 = arith.constant 0 : i32
    return %c0_i32, %c0_i32_0, %c0_i32_1 : i32, i32, i32
  }
  func.func @transform_1(%arg0: i32) -> (i32, i32) {
    %c0_i32 = arith.constant 0 : i32
    %c0_i32_0 = arith.constant 0 : i32
    %c0_i32_1 = arith.constant 0 : i32
    return %c0_i32, %c0_i32_0 : i32, i32
  }
  func.func @transform_2(%arg0: i32) -> (i32, i32) {
    %c0_i32 = arith.constant 0 : i32
    %c0_i32_0 = arith.constant 0 : i32
    %c0_i32_1 = arith.constant 0 : i32
    return %c0_i32, %c0_i32_0 : i32, i32
  }
  func.func @transform_3(%arg0: i32) -> (i32, i32) {
    %c0_i32 = arith.constant 0 : i32
    %c0_i32_0 = arith.constant 0 : i32
    %c0_i32_1 = arith.constant 0 : i32
    return %c0_i32, %c0_i32_0 : i32, i32
  }
  func.func @transform_4(%arg0: i32) -> (i32, i32) {
    %c0_i32 = arith.constant 0 : i32
    %c0_i32_0 = arith.constant 0 : i32
    %c0_i32_1 = arith.constant 0 : i32
    return %c0_i32, %c0_i32_0 : i32, i32
  }
  func.func @transform_5(%arg0: i32) -> (i32, i32) {
    %c0_i32 = arith.constant 0 : i32
    %c0_i32_0 = arith.constant 0 : i32
    %c0_i32_1 = arith.constant 0 : i32
    return %c0_i32, %c0_i32_0 : i32, i32
  }
  func.func @transform_6(%arg0: i32) -> (i32, i32) {
    %c0_i32 = arith.constant 0 : i32
    %c0_i32_0 = arith.constant 0 : i32
    %c0_i32_1 = arith.constant 0 : i32
    return %c0_i32, %c0_i32_0 : i32, i32
  }
  func.func @transform_7(%arg0: i32) -> (i32, i32) {
    %c0_i32 = arith.constant 0 : i32
    %c0_i32_0 = arith.constant 0 : i32
    %c0_i32_1 = arith.constant 0 : i32
    return %c0_i32, %c0_i32_0 : i32, i32
  }
  func.func @transform_8(%arg0: i32) -> (i32, i32) {
    %c0_i32 = arith.constant 0 : i32
    %c0_i32_0 = arith.constant 0 : i32
    %c0_i32_1 = arith.constant 0 : i32
    return %c0_i32, %c0_i32_0 : i32, i32
  }
  func.func @transform_9(%arg0: i32) -> (i32, i32) {
    %c0_i32 = arith.constant 0 : i32
    %c0_i32_0 = arith.constant 0 : i32
    %c0_i32_1 = arith.constant 0 : i32
    return %c0_i32, %c0_i32_0 : i32, i32
  }
  func.func @transform_10(%arg0: i32) -> (i32, i32) {
    %c0_i32 = arith.constant 0 : i32
    %c0_i32_0 = arith.constant 0 : i32
    %c0_i32_1 = arith.constant 0 : i32
    return %c0_i32, %c0_i32_0 : i32, i32
  }
}

</mosaic_0001>

<bundles_post_ra>
// kernel: tpu_custom_call.1
= control target key start
LH: loop header
LB: loop body
LE: loop exit
PB: predicated region body
PF: predicated region fallthrough
CT: control target
= control target key end

     0   :  { %15 = vsyncpa [#allocation7], 0  ;;  %s1815_s0 = inlined_call_operand.hbm [shape: f32[2,16,64], index: 0, kind: input, shape index: {}]   ;;  %s1816_s1 = inlined_call_operand.hbm [shape: f32[192,128], index: 1, kind: input, shape index: {}]   ;;  %s1817_s2 = inlined_call_operand.vmem [shape: f32[1,128], index: 2, kind: input, shape index: {}]   ;;  %s1818_s3 = inlined_call_operand.vmem [shape: f32[1,128], index: 3, kind: input, shape index: {}]   ;;  %s1819_s4 = inlined_call_operand.vmem [shape: f32[1,128], index: 4, kind: input, shape index: {}]   ;;  %s1820_s5 = inlined_call_operand.hbm [shape: f32[384,128], index: 5, kind: input, shape index: {}]   ;;  %s1821_s6 = inlined_call_operand.vmem [shape: f32[1,128], index: 6, kind: input, shape index: {}]   ;;  %s1822_s7 = inlined_call_operand.vmem [shape: f32[1,128], index: 7, kind: input, shape index: {}]   ;;  %s1823_s8 = inlined_call_operand.vmem [shape: f32[1,128], index: 8, kind: input, shape index: {}]   ;;  %s1824_s9 = inlined_call_operand.hbm [shape: f32[128,128], index: 9, kind: input, shape index: {}]   ;;  %s1825_s10 = inlined_call_operand.hbm [shape: f32[32,128], index: 10, kind: output, shape index: {}]  }
   0x1   :  { %16 = vsyncpa [#allocation10], 0 }
   0x2   :  { %17 = vsyncpa [#allocation13], 0 }
   0x3   :  { %18 = vsyncpa [#allocation8], 0  ;;  %s1452_s13 = smov [#allocation9]   ;;  %s1453_s15 = smov [#allocation6]  }
   0x4   :  { %s36_s14 = sshll.u32 %s1452_s13, 4  ;;  %s24_s16 = sshll.u32 %s1453_s15, 4  ;;  %s37_s14 = int_to_ptr.vmem [resolvable:$true] %s36_s14  ;;  %s25_s16 = int_to_ptr.vmem [resolvable:$true] %s24_s16 }
   0x5   :  { %s1352_s17 = scalar_lea.vmem %s37_s14, 3072  ;;  %p1357_p1 = scmp.lt.s32.totalorder %s37_s14, %s37_s14 }
   0x6   :  { %p1353_p0 = scmp.ne.s32.totalorder %s37_s14, %s1352_s17  ;;  %p1358_p2 = scmp.lt.s32.totalorder %s1352_s17, %s1352_s17 }
   0x8   :  { %p1359_p3 = por %p1358_p2, %p1357_p1 }
   0xa   :  { %p1360_p4 = pnand %p1359_p3, %p1353_p0 }
   0xc   :  { %1363 = shalt.err (!%p1360_p4)
}
   0xd   :  { %s1454_s18 = smov 128   ;;  %s1455_s19 = smov 8  }
   0xe   :  { %42 = dma.hbm_to_vmem [thread:$0]  %s1816_s1, 3072, %s37_s14, [#allocation10], %s1454_s18, %s1454_s18, %s1455_s19  }
   0xf   :  { %s1372_s22 = scalar_lea.vmem %s25_s16, 512  ;;  %p1377_p6 = scmp.lt.s32.totalorder %s25_s16, %s25_s16 }
  0x10   :  { %p1373_p5 = scmp.ne.s32.totalorder %s25_s16, %s1372_s22  ;;  %p1378_p7 = scmp.lt.s32.totalorder %s1372_s22, %s1372_s22 }
  0x12   :  { %p1379_p8 = por %p1378_p7, %p1377_p6 }
  0x14   :  { %p1380_p9 = pnand %p1379_p8, %p1373_p5 }
  0x16   :  { %1383 = shalt.err (!%p1380_p9)
}
  0x17   :  { %30 = dma.hbm_to_vmem [thread:$0]  %s1815_s0, 512, %s25_s16, [#allocation7], %s1454_s18, %s1454_s18, %s1455_s19  }
  0x18   :  { %s1456_s25 = smov [#allocation11]   ;;  %s1457_s27 = smov [#allocation12]  }
  0x19   :  { %s54_s26 = sshll.u32 %s1456_s25, 4  ;;  %s72_s28 = sshll.u32 %s1457_s27, 4  ;;  %s55_s26 = int_to_ptr.vmem [resolvable:$true] %s54_s26  ;;  %s73_s28 = int_to_ptr.vmem [resolvable:$true] %s72_s28 }
  0x1a   :  { %s1392_s1 = scalar_lea.vmem %s55_s26, 6144  ;;  %p1397_p11 = scmp.lt.s32.totalorder %s55_s26, %s55_s26 }
  0x1b   :  { %p1393_p10 = scmp.ne.s32.totalorder %s55_s26, %s1392_s1  ;;  %p1398_p12 = scmp.lt.s32.totalorder %s1392_s1, %s1392_s1 }
  0x1d   :  { %p1399_p13 = por %p1398_p12, %p1397_p11 }
  0x1f   :  { %p1400_p0 = pnand %p1399_p13, %p1393_p10 }
  0x21   :  { %1403 = shalt.err (!%p1400_p0)
}
  0x22   :  { %60 = dma.hbm_to_vmem [thread:$0]  %s1820_s5, 6144, %s55_s26, [#allocation10], %s1454_s18, %s1454_s18, %s1455_s19  }
  0x23   :  { %s1412_s0 = scalar_lea.vmem %s73_s28, 2048  ;;  %p1417_p2 = scmp.lt.s32.totalorder %s73_s28, %s73_s28 }
  0x24   :  { %p1413_p1 = scmp.ne.s32.totalorder %s73_s28, %s1412_s0  ;;  %p1418_p3 = scmp.lt.s32.totalorder %s1412_s0, %s1412_s0 }
  0x26   :  { %p1419_p4 = por %p1418_p3, %p1417_p2 }
  0x28   :  { %p1420_p5 = pnand %p1419_p4, %p1413_p1 }
  0x2a   :  { %1423 = shalt.err (!%p1420_p5)
}
  0x2b   :  { %78 = dma.hbm_to_vmem [thread:$0]  %s1824_s9, 2048, %s73_s28, [#allocation13], %s1454_s18, %s1454_s18, %s1455_s19  }
  0x2c   :  { %1444 = dma.done.wait [#allocation7], 512  }
  0x2d   :  { %1445 = vsyncadd [#allocation7], 4294966784 }
  0x2e   :  { %1446 = dma.done.wait [#allocation10], 9216  }
  0x2f   :  { %1447 = vsyncadd [#allocation10], 4294958080 }
  0x30   :  { %1448 = dma.done.wait [#allocation13], 2048  }
  0x31   :  { %1449 = vsyncadd [#allocation13], 4294965248  ;;  %vm107_vm0 = vcmask 523264   ;;  %vm110_vm1 = vcmask 517120   ;;  %v1458_v0 = vmov 0.0   ;;  %v115_v1 = vld [vmem:[#allocation6] sm:$0xff] }
  0x32   :  { %108 = vst.msk [vmem:[#allocation2] sm:$0xff] %vm107_vm0, %v1458_v0  ;;  %109 = vst.msk [vmem:[#allocation2 + $0x8] sm:$0xff] %vm107_vm0, %v1458_v0  ;;  %215 = vmatprep.subr.mxu0 %v1458_v0  ;;  %1152 = vmatprep.subr.mxu1 %v1458_v0  ;;  %v116_v2 = vld [vmem:[#allocation6 + $0x8] sm:$0xff]  ;;  %v117_v3 = vld [vmem:[#allocation6 + $0x10] sm:$0xff]  ;;  %s1459_s5 = smov 64   ;;  %vm151_vm2 = vcmask 1048064  }
  0x33   :  { %112 = vst.msk [vmem:[#allocation2 + $0x18] sm:$0xff] %vm107_vm0, %v1458_v0  ;;  %113 = vst.msk [vmem:[#allocation2 + $0x20] sm:$0xff] %vm107_vm0, %v1458_v0  ;;  %v118_v4 = vld [vmem:[#allocation6 + $0x18] sm:$0xff]  ;;  %v186_v6 = vld [vmem:[#allocation9 + $0x70] sm:$0xff]  ;;  %vm1460_vm3 = vmmov 0   ;;  %s1461_s22 = smov [#allocation14]  }
  0x34   :  { %508 = vst [vmem:[#allocation4] sm:$0xff] %v1458_v0  ;;  %509 = vst [vmem:[#allocation4 + $0x8] sm:$0xff] %v1458_v0  ;;  %v187_v5 = vld [vmem:[#allocation9 + $0x78] sm:$0xff]  ;;  %v185_v7 = vld [vmem:[#allocation9 + $0x68] sm:$0xff]  ;;  %1184 = vmatprep.mubr.msk.f32.mxu1 %vm1460_vm3, %v1458_v0  ;;  %s996_s23 = sshll.u32 %s1461_s22, 4  ;;  %s997_s23 = int_to_ptr.vmem [resolvable:$true] %s996_s23 }
  0x35   :  { %510 = vst [vmem:[#allocation4 + $0x10] sm:$0x3] %v1458_v0  ;;  %511 = vst [vmem:[#allocation4 + $0x18] sm:$0xff] %v1458_v0  ;;  %216 = vmatpush1.msra.mxu0 %v187_v5  ;;  %v184_v8 = vld [vmem:[#allocation9 + $0x60] sm:$0xff]  ;;  %v183_v11 = vld [vmem:[#allocation9 + $0x58] sm:$0xff]  ;;  %p1429_p7 = scmp.lt.s32.totalorder %s997_s23, %s997_s23 }
  0x36   :  { %512 = vst [vmem:[#allocation4 + $0x20] sm:$0xff] %v1458_v0  ;;  %513 = vst [vmem:[#allocation4 + $0x28] sm:$0x3] %v1458_v0  ;;  %217 = vmatprep.subr.mxu0 %v1458_v0  ;;  %v182_v16 = vld [vmem:[#allocation9 + $0x50] sm:$0xff]  ;;  %v181_v22 = vld [vmem:[#allocation9 + $0x48] sm:$0xff] }
  0x37   :  { %111 = vst.msk [vmem:[#allocation2 + $0x10] sm:$0x3] %vm110_vm1, %v1458_v0  ;;  %114 = vst.msk [vmem:[#allocation2 + $0x28] sm:$0x3] %vm110_vm1, %v1458_v0  ;;  %218 = vmatpush1.msra.mxu0 %v186_v6  ;;  %v180_v24 = vld [vmem:[#allocation9 + $0x40] sm:$0xff]  ;;  %v1577_v25 = vld [vmem:[#allocation12 + $0x78] sm:$0xff] }
  0x38   :  { %119 = vst.msk [vmem:[#allocation2 + $0x1] sm:$0xff] %vm107_vm0, %v115_v1  ;;  %120 = vst.msk [vmem:[#allocation2 + $0x9] sm:$0xff] %vm107_vm0, %v116_v2  ;;  %219 = vmatprep.subr.mxu0 %v1458_v0  ;;  %v179_v26 = vld [vmem:[#allocation9 + $0x38] sm:$0xff]  ;;  %1153 = vmatpush3.msra.mxu1 %v1577_v25  ;;  %v178_v27 = vld [vmem:[#allocation9 + $0x30] sm:$0xff] }
  0x39   :  { %121 = vst.msk [vmem:[#allocation2 + $0x19] sm:$0xff] %vm107_vm0, %v117_v3  ;;  %122 = vst.msk [vmem:[#allocation2 + $0x21] sm:$0xff] %vm107_vm0, %v118_v4  ;;  %220 = vmatpush1.msra.mxu0 %v185_v7  ;;  %1154 = vmatprep.subr.mxu1 %v1458_v0  ;;  %v177_v29 = vld [vmem:[#allocation9 + $0x28] sm:$0xff]  ;;  %v176_v30 = vld [vmem:[#allocation9 + $0x20] sm:$0xff] }
  0x3a   :  { %221 = vmatprep.subr.mxu0 %v1458_v0  ;;  %v175_v31 = vld [vmem:[#allocation9 + $0x18] sm:$0xff]  ;;  %v174_v32 = vld [vmem:[#allocation9 + $0x10] sm:$0xff]  ;;  %v173_v33 = vld [vmem:[#allocation9 + $0x8] sm:$0xff] }
  0x3b   :  { %222 = vmatpush1.msra.mxu0 %v184_v8  ;;  %v172_v34 = vld [vmem:[#allocation9] sm:$0xff]  ;;  %v195_v35 = vld [vmem:[#allocation9 + $0xb8] sm:$0xff]  ;;  %v194_v36 = vld [vmem:[#allocation9 + $0xb0] sm:$0xff] }
  0x3c   :  { %223 = vmatprep.subr.mxu0 %v1458_v0  ;;  %v193_v37 = vld [vmem:[#allocation9 + $0xa8] sm:$0xff]  ;;  %v192_v38 = vld [vmem:[#allocation9 + $0xa0] sm:$0xff]  ;;  %v191_v39 = vld [vmem:[#allocation9 + $0x98] sm:$0xff] }
  0x3d   :  { %224 = vmatpush1.msra.mxu0 %v183_v11  ;;  %v190_v40 = vld [vmem:[#allocation9 + $0x90] sm:$0xff]  ;;  %v189_v41 = vld [vmem:[#allocation9 + $0x88] sm:$0xff]  ;;  %v188_v42 = vld [vmem:[#allocation9 + $0x80] sm:$0xff] }
  0x3e   :  { %225 = vmatprep.subr.mxu0 %v1458_v0  ;;  %v1602_v54 = vld [vmem:[#allocation12 + $0x70] sm:$0xff]  ;;  %v1606_v55 = vld [vmem:[#allocation12 + $0x68] sm:$0xff]  ;;  %v1610_v56 = vld [vmem:[#allocation12 + $0x60] sm:$0xff] }
  0x3f   :  { %v131_v9 = vld [vmem:[#allocation2 + $0x1] sm:$0xff]  ;;  %v132_v13 = vld [vmem:[#allocation2 + $0x9] sm:$0xff]  ;;  %226 = vmatpush1.msra.mxu0 %v182_v16  ;;  %1155 = vmatpush3.msra.mxu1 %v1602_v54  ;;  %v1614_v57 = vld [vmem:[#allocation12 + $0x58] sm:$0xff] }
  0x40   :  { %v133_v10 = vld [vmem:[#allocation2 + $0x19] sm:$0xff]  ;;  %139 = vrot.lane.b32.xlu0 %v131_v9, %s1459_s5  ;;  %v134_v14 = vld [vmem:[#allocation2 + $0x21] sm:$0xff]  ;;  %v157_v20 = vld [vmem:[#allocation2 + $0xa] sm:$0xff]  ;;  %227 = vmatprep.subr.mxu0 %v1458_v0 }
  0x41   :  { %143 = vrot.lane.b32.xlu1 %v133_v10, %s1459_s5  ;;  %v123_v12 = vld [vmem:[#allocation2] sm:$0xff]  ;;  %v124_v15 = vld [vmem:[#allocation2 + $0x8] sm:$0xff]  ;;  %v125_v17 = vld [vmem:[#allocation2 + $0x18] sm:$0xff]  ;;  %161 = vst.msk [vmem:[#allocation3 + $0x18] sm:$0xff] %vm107_vm0, %v157_v20  ;;  %228 = vmatpush1.msra.mxu0 %v181_v22 }
  0x42   :  { %127 = vst.msk [vmem:[#allocation3] sm:$0xff] %vm107_vm0, %v123_v12  ;;  %128 = vst.msk [vmem:[#allocation3 + $0x10] sm:$0xff] %vm107_vm0, %v124_v15  ;;  %v156_v18 = vld [vmem:[#allocation2 + $0x2] sm:$0xff]  ;;  %v158_v21 = vld [vmem:[#allocation2 + $0x1a] sm:$0xff]  ;;  %229 = vmatprep.subr.mxu0 %v1458_v0  ;;  %1156 = vmatprep.subr.mxu1 %v1458_v0 }
  0x43   :  { %129 = vst.msk [vmem:[#allocation3 + $0x20] sm:$0xff] %vm107_vm0, %v125_v17  ;;  %160 = vst.msk [vmem:[#allocation3 + $0x8] sm:$0xff] %vm107_vm0, %v156_v18  ;;  %v126_v19 = vld [vmem:[#allocation2 + $0x20] sm:$0xff]  ;;  %230 = vmatpush1.msra.mxu0 %v180_v24  ;;  %1157 = vmatpush3.msra.mxu1 %v1606_v55  ;;  %v1618_v58 = vld [vmem:[#allocation12 + $0x50] sm:$0xff] }
  0x44   :  { %141 = vrot.lane.b32.xlu0 %v132_v13, %s1459_s5  ;;  %130 = vst.msk [vmem:[#allocation3 + $0x30] sm:$0xff] %vm107_vm0, %v126_v19  ;;  %162 = vst.msk [vmem:[#allocation3 + $0x28] sm:$0xff] %vm107_vm0, %v158_v21  ;;  %v159_v23 = vld [vmem:[#allocation2 + $0x22] sm:$0xff]  ;;  %231 = vmatprep.subr.mxu0 %v1458_v0  ;;  %v1630_v61 = vld [vmem:[#allocation12 + $0x38] sm:$0xff] }
  0x45   :  { %145 = vrot.lane.b32.xlu1 %v134_v14, %s1459_s5  ;;  %163 = vst.msk [vmem:[#allocation3 + $0x38] sm:$0xff] %vm107_vm0, %v159_v23  ;;  %232 = vmatpush1.msra.mxu0 %v179_v26  ;;  %v1622_v59 = vld [vmem:[#allocation12 + $0x48] sm:$0xff]  ;;  %v1626_v60 = vld [vmem:[#allocation12 + $0x40] sm:$0xff]  ;;  %v1634_v62 = vld [vmem:[#allocation12 + $0x30] sm:$0xff] }
  0x46   :  { %233 = vmatprep.subr.mxu0 %v1458_v0  ;;  %1158 = vmatprep.subr.mxu1 %v1458_v0  ;;  %v1638_v63 = vld [vmem:[#allocation12 + $0x28] sm:$0xff]  ;;  %v1642_v1 = vld [vmem:[#allocation12 + $0x20] sm:$0xff]  ;;  %v1646_v2 = vld [vmem:[#allocation12 + $0x18] sm:$0xff] }
  0x47   :  { %234 = vmatpush1.msra.mxu0 %v178_v27  ;;  %1159 = vmatpush3.msra.mxu1 %v1610_v56  ;;  %v1648_v3 = vld [vmem:[#allocation12 + $0x10] sm:$0xff]  ;;  %v1654_v4 = vld [vmem:[#allocation12 + $0x8] sm:$0xff]  ;;  %v1658_v5 = vld [vmem:[#allocation12] sm:$0xff] }
  0x48   :  { %235 = vmatprep.subr.mxu0 %v1458_v0  ;;  %v167_v47 = vld [vmem:[#allocation3 + $0x18] sm:$0xff]  ;;  %1160 = vmatprep.subr.mxu1 %v1458_v0  ;;  %v1010_v9 = vld [vmem:[%s1817_s2] ss:$0 sm:$0xff] }
  0x49   :  { %236 = vmatpush1.msra.mxu0 %v177_v29  ;;  %1161 = vmatpush3.msra.mxu1 %v1614_v57  ;;  %v380_v29 = vlaneseq }
  0x4a   :  { %v165_v28 = vld [vmem:[#allocation3 + $0x8] sm:$0xff]  ;;  %237 = vmatprep.subr.mxu0 %v1458_v0  ;;  %1162 = vmatprep.subr.mxu1 %v1458_v0 }
  0x4b   :  { %1011 = vmatprep.mubr.msk.f32.mxu0 %vm107_vm0, %v165_v28  ;;  %238 = vmatpush1.msra.mxu0 %v176_v30  ;;  %v169_v49 = vld [vmem:[#allocation3 + $0x28] sm:$0xff]  ;;  %v381_v30 = vshrl.u32 %v380_v29, 7  ;;  %v562_v29 = vld [vmem:[#allocation11 + $0x40] sm:$0xff] }
  0x4c   :  { %239 = vmatprep.subr.mxu0 %v1458_v0  ;;  %v171_v52 = vld [vmem:[#allocation3 + $0x38] sm:$0xff]  ;;  %1163 = vmatpush3.msra.mxu1 %v1618_v58 }
  0x4d   :  { %240 = vmatpush1.msra.mxu0 %v175_v31  ;;  %1164 = vmatprep.subr.mxu1 %v1458_v0  ;;  %v1700_v31 = vsub.s32 0, %v381_v30  ;;  %v577_v30 = vld [vmem:[#allocation11 + $0xb8] sm:$0xff] }
  0x4e   :  { %241 = vmatprep.subr.mxu0 %v1458_v0  ;;  %1165 = vmatpush3.msra.mxu1 %v1622_v59 }
  0x4f   :  { %242 = vmatpush1.msra.mxu0 %v174_v32  ;;  %1166 = vmatprep.subr.mxu1 %v1458_v0 }
  0x50   :  { %243 = vmatprep.subr.mxu0 %v1458_v0  ;;  %1167 = vmatpush3.msra.mxu1 %v1626_v60 }
  0x51   :  { %244 = vmatpush1.msra.mxu0 %v173_v33  ;;  %1168 = vmatprep.subr.mxu1 %v1458_v0 }
  0x52   :  { %245 = vmatprep.subr.mxu0 %v1458_v0  ;;  %1169 = vmatpush3.msra.mxu1 %v1630_v61 }
  0x53   :  { %246 = vmatpush1.msra.mxu0 %v172_v34  ;;  %1170 = vmatprep.subr.mxu1 %v1458_v0 }
  0x54   :  { %263 = vmatprep.subr.mxu0 %v1458_v0  ;;  %1171 = vmatpush3.msra.mxu1 %v1634_v62 }
  0x55   :  { %264 = vmatpush2.msra.mxu0 %v195_v35  ;;  %1172 = vmatprep.subr.mxu1 %v1458_v0 }
  0x56   :  { %265 = vmatprep.subr.mxu0 %v1458_v0  ;;  %1173 = vmatpush3.msra.mxu1 %v1638_v63 }
  0x57   :  { %266 = vmatpush2.msra.mxu0 %v194_v36  ;;  %1174 = vmatprep.subr.mxu1 %v1458_v0 }
  0x58   :  { %267 = vmatprep.subr.mxu0 %v1458_v0  ;;  %1175 = vmatpush3.msra.mxu1 %v1642_v1 }
  0x59   :  { %268 = vmatpush2.msra.mxu0 %v193_v37  ;;  %1176 = vmatprep.subr.mxu1 %v1458_v0 }
  0x5a   :  { %269 = vmatprep.subr.mxu0 %v1458_v0  ;;  %1177 = vmatpush3.msra.mxu1 %v1646_v2 }
  0x5b   :  { %270 = vmatpush2.msra.mxu0 %v192_v38  ;;  %1178 = vmatprep.subr.mxu1 %v1458_v0 }
  0x5c   :  { %271 = vmatprep.subr.mxu0 %v1458_v0  ;;  %1179 = vmatpush3.msra.mxu1 %v1648_v3 }
  0x5d   :  { %272 = vmatpush2.msra.mxu0 %v191_v39  ;;  %1180 = vmatprep.subr.mxu1 %v1458_v0 }
  0x5e   :  { %273 = vmatprep.subr.mxu0 %v1458_v0  ;;  %1181 = vmatpush3.msra.mxu1 %v1654_v4 }
  0x5f   :  { %274 = vmatpush2.msra.mxu0 %v190_v40  ;;  %1182 = vmatprep.subr.mxu1 %v1458_v0 }
  0x60   :  { %275 = vmatprep.subr.mxu0 %v1458_v0  ;;  %1183 = vmatpush3.msra.mxu1 %v1658_v5 }
  0x61   :  { %276 = vmatpush2.msra.mxu0 %v189_v41  ;;  %1187 = vmatprep.subr.mxu1 %v1458_v0 }
  0x62   :  { %277 = vmatprep.subr.mxu0 %v1458_v0 }
  0x63   :  { %278 = vmatpush2.msra.mxu0 %v188_v42 }
  0xb2   :  { %v140_v43 = vpop.permute.xlu0 %139 }
  0xb3   :  { %v144_v44 = vpop.permute.xlu1 %143  ;;  %152 = vst.msk [vmem:[#allocation3] sm:$0xff] %vm151_vm2, %v140_v43 }
  0xb4   :  { %154 = vst.msk [vmem:[#allocation3 + $0x20] sm:$0xff] %vm151_vm2, %v144_v44 }
  0xb6   :  { %v142_v45 = vpop.permute.xlu0 %141 }
  0xb7   :  { %v146_v46 = vpop.permute.xlu1 %145  ;;  %153 = vst.msk [vmem:[#allocation3 + $0x10] sm:$0xff] %vm151_vm2, %v142_v45 }
  0xb8   :  { %155 = vst.msk [vmem:[#allocation3 + $0x30] sm:$0xff] %vm151_vm2, %v146_v46 }
  0xba   :  { %v164_v48 = vld [vmem:[#allocation3] sm:$0xff] }
  0xbb   :  { %280 = vmatmul.mubr.f32.vlgmr.msra.gmra.mxu0 %v164_v48  ;;  %v168_v51 = vld [vmem:[#allocation3 + $0x20] sm:$0xff] }
  0xbc   :  { %1012 = vmatprep.mubr.msk.f32.mxu0 %vm107_vm0, %v167_v47 }
  0xbe   :  { %v166_v50 = vld [vmem:[#allocation3 + $0x10] sm:$0xff] }
  0xbf   :  { %285 = vmatmul.mubr.f32.gmra.mxu0 %v166_v50  ;;  %v170_v53 = vld [vmem:[#allocation3 + $0x30] sm:$0xff] }
  0xc0   :  { %1013 = vmatprep.mubr.msk.f32.mxu0 %vm107_vm0, %v169_v49 }
  0xc3   :  { %290 = vmatmul.mubr.f32.gmra.mxu0 %v168_v51 }
  0xc4   :  { %1014 = vmatprep.mubr.msk.f32.mxu0 %vm107_vm0, %v171_v52 }
  0xc7   :  { %295 = vmatmul.mubr.f32.gmra.mxu0 %v170_v53  ;;  %v585_v53 = vld [vmem:[#allocation11 + $0xf8] sm:$0xff] }
  0xc8   :  { %1054 = vmatprep.subr.mxu0 %v585_v53  ;;  %v571_v53 = vld [vmem:[#allocation11 + $0x88] sm:$0xff] }
 0x17b   :  { %v281_v6 = vpop.f32.mrf.mxu0 }
 0x17c   :  { %v282_v13 = vadd.f32 %v1010_v9, %v281_v6  ;;  %v601_v6 = vld [vmem:[#allocation11 + $0x178] sm:$0xff] }
 0x17d   :  { %v283_v7 = vpop.f32.mrf.mxu0 }
 0x17e   :  { %v569_v7 = vld [vmem:[#allocation11 + $0x78] sm:$0xff] }
 0x17f   :  { %v286_v8 = vpop.f32.mrf.mxu0  ;;  %1055 = vmatpush3.msra.mxu0 %v569_v7  ;;  %v555_v7 = vld [vmem:[#allocation11 + $0x8] sm:$0xff] }
 0x180   :  { %v287_v11 = vadd.f32 %v1010_v9, %v286_v8  ;;  %v584_v8 = vld [vmem:[#allocation11 + $0xf0] sm:$0xff] }
 0x181   :  { %v288_v10 = vpop.f32.mrf.mxu0  ;;  %1056 = vmatprep.subr.mxu0 %v584_v8  ;;  %v570_v8 = vld [vmem:[#allocation11 + $0x80] sm:$0xff] }
 0x182   :  { %v300_v16 = vadd.f32 %v287_v11, %v282_v13  ;;  %v568_v10 = vld [vmem:[#allocation11 + $0x70] sm:$0xff] }
 0x183   :  { %v291_v12 = vpop.f32.mrf.mxu0  ;;  %1057 = vmatpush3.msra.mxu0 %v568_v10  ;;  %v554_v10 = vld [vmem:[#allocation11] sm:$0xff] }
 0x184   :  { %v292_v14 = vadd.f32 %v1010_v9, %v291_v12  ;;  %v599_v12 = vld [vmem:[#allocation11 + $0x168] sm:$0xff] }
 0x185   :  { %v293_v15 = vpop.f32.mrf.mxu0 }
 0x186   :  { %v301_v18 = vadd.f32 %v300_v16, %v292_v14  ;;  %v598_v15 = vld [vmem:[#allocation11 + $0x160] sm:$0xff] }
 0x187   :  { %v296_v17 = vpop.f32.mrf.mxu0  ;;  %v566_v16 = vld [vmem:[#allocation11 + $0x60] sm:$0xff] }
 0x188   :  { %v297_v19 = vadd.f32 %v1010_v9, %v296_v17  ;;  %v600_v9 = vld [vmem:[#allocation11 + $0x170] sm:$0xff]  ;;  %v581_v17 = vld [vmem:[#allocation11 + $0xd8] sm:$0xff] }
 0x189   :  { %v298_v20 = vpop.f32.mrf.mxu0 }
 0x18a   :  { %v302_v21 = vadd.f32 %v301_v18, %v297_v19  ;;  %v597_v18 = vld [vmem:[#allocation11 + $0x158] sm:$0xff]  ;;  %v580_v20 = vld [vmem:[#allocation11 + $0xd0] sm:$0xff] }
 0x18c   :  { %v303_v22 = vrot.slane %v302_v21, 4 }
 0x18e   :  { %v304_v23 = vadd.f32 %v303_v22, %v302_v21  ;;  %v596_v21 = vld [vmem:[#allocation11 + $0x150] sm:$0xff] }
 0x18f   :  { %v564_v22 = vld [vmem:[#allocation11 + $0x50] sm:$0xff] }
 0x190   :  { %v305_v24 = vrot.slane %v304_v23, 2 }
 0x192   :  { %v306_v26 = vadd.f32 %v305_v24, %v304_v23  ;;  %v579_v23 = vld [vmem:[#allocation11 + $0xc8] sm:$0xff] }
 0x193   :  { %v595_v24 = vld [vmem:[#allocation11 + $0x148] sm:$0xff] }
 0x194   :  { %v307_v27 = vrot.slane %v306_v26, 1 }
 0x196   :  { %v308_v28 = vadd.f32 %v307_v27, %v306_v26  ;;  %v563_v26 = vld [vmem:[#allocation11 + $0x48] sm:$0xff]  ;;  %v578_v27 = vld [vmem:[#allocation11 + $0xc0] sm:$0xff] }
 0x198   :  { %1185 = vmatmul.mubr.f32.vlgmr.msra.gmra.mxu1 %v308_v28  ;;  %v594_v28 = vld [vmem:[#allocation11 + $0x140] sm:$0xff] }
 0x199   :  { %1188 = vmatpush3.msra.mxu1 %v1577_v25  ;;  %1219 = vmatprep.mubr.msk.f32.mxu1 %vm1460_vm3, %v1458_v0 }
 0x19a   :  { %1189 = vmatprep.subr.mxu1 %v1458_v0 }
 0x19b   :  { %1190 = vmatpush3.msra.mxu1 %v1602_v54 }
 0x19c   :  { %1191 = vmatprep.subr.mxu1 %v1458_v0 }
 0x19d   :  { %1192 = vmatpush3.msra.mxu1 %v1606_v55 }
 0x19e   :  { %1193 = vmatprep.subr.mxu1 %v1458_v0 }
 0x19f   :  { %1194 = vmatpush3.msra.mxu1 %v1610_v56 }
 0x1a0   :  { %1195 = vmatprep.subr.mxu1 %v1458_v0 }
 0x1a1   :  { %1196 = vmatpush3.msra.mxu1 %v1614_v57 }
 0x1a2   :  { %1197 = vmatprep.subr.mxu1 %v1458_v0 }
 0x1a3   :  { %1198 = vmatpush3.msra.mxu1 %v1618_v58 }
 0x1a4   :  { %1199 = vmatprep.subr.mxu1 %v1458_v0 }
 0x1a5   :  { %1200 = vmatpush3.msra.mxu1 %v1622_v59 }
 0x1a6   :  { %1201 = vmatprep.subr.mxu1 %v1458_v0 }
 0x1a7   :  { %1202 = vmatpush3.msra.mxu1 %v1626_v60 }
 0x1a8   :  { %1203 = vmatprep.subr.mxu1 %v1458_v0 }
 0x1a9   :  { %1204 = vmatpush3.msra.mxu1 %v1630_v61 }
 0x1aa   :  { %1205 = vmatprep.subr.mxu1 %v1458_v0 }
 0x1ab   :  { %1206 = vmatpush3.msra.mxu1 %v1634_v62 }
 0x1ac   :  { %1207 = vmatprep.subr.mxu1 %v1458_v0 }
 0x1ad   :  { %1208 = vmatpush3.msra.mxu1 %v1638_v63 }
 0x1ae   :  { %1209 = vmatprep.subr.mxu1 %v1458_v0 }
 0x1af   :  { %1210 = vmatpush3.msra.mxu1 %v1642_v1 }
 0x1b0   :  { %1211 = vmatprep.subr.mxu1 %v1458_v0 }
 0x1b1   :  { %1212 = vmatpush3.msra.mxu1 %v1646_v2 }
 0x1b2   :  { %1213 = vmatprep.subr.mxu1 %v1458_v0 }
 0x1b3   :  { %1214 = vmatpush3.msra.mxu1 %v1648_v3 }
 0x1b4   :  { %1215 = vmatprep.subr.mxu1 %v1458_v0 }
 0x1b5   :  { %1216 = vmatpush3.msra.mxu1 %v1654_v4 }
 0x1b6   :  { %1217 = vmatprep.subr.mxu1 %v1458_v0 }
 0x1b7   :  { %1218 = vmatpush3.msra.mxu1 %v1658_v5 }
 0x1b8   :  { %1222 = vmatprep.subr.mxu1 %v601_v6 }
 0x258   :  { %v375_v32 = vpop.f32.mrf.mxu1 }
 0x259   :  { %v379_v33 = vmul.f32 0.001953125, %v375_v32  ;;  %v593_v32 = vld [vmem:[#allocation11 + $0x138] sm:$0xff] }
 0x25a   :  { %v1186_v34 = vpop.f32.mrf.mxu1 }
 0x25b   :  { %v383_v35 = vrot.slane %v379_v33, %v1700_v31  ;;  %v561_v33 = vld [vmem:[#allocation11 + $0x38] sm:$0xff]  ;;  %v576_v34 = vld [vmem:[#allocation11 + $0xb0] sm:$0xff] }
 0x25d   :  { %v1703_v36 = vsub.f32 %v282_v13, %v383_v35  ;;  %v1705_v37 = vsub.f32 %v287_v11, %v383_v35  ;;  %v1707_v38 = vsub.f32 %v292_v14, %v383_v35  ;;  %v1709_v39 = vsub.f32 %v297_v19, %v383_v35  ;;  %v583_v11 = vld [vmem:[#allocation11 + $0xe8] sm:$0xff]  ;;  %v582_v14 = vld [vmem:[#allocation11 + $0xe0] sm:$0xff]  ;;  %v565_v19 = vld [vmem:[#allocation11 + $0x58] sm:$0xff] }
 0x25e   :  { %1058 = vmatprep.subr.mxu0 %v583_v11  ;;  %v567_v13 = vld [vmem:[#allocation11 + $0x68] sm:$0xff]  ;;  %v592_v35 = vld [vmem:[#allocation11 + $0x130] sm:$0xff] }
 0x25f   :  { %v388_v40 = vmul.f32 %v1703_v36, %v1703_v36  ;;  %v389_v41 = vmul.f32 %v1705_v37, %v1705_v37  ;;  %v390_v42 = vmul.f32 %v1707_v38, %v1707_v38  ;;  %v391_v44 = vmul.f32 %v1709_v39, %v1709_v39  ;;  %1059 = vmatpush3.msra.mxu0 %v567_v13 }
 0x260   :  { %1060 = vmatprep.subr.mxu0 %v582_v14 }
 0x261   :  { %v392_v43 = vadd.f32 %v389_v41, %v388_v40  ;;  %1061 = vmatpush3.msra.mxu0 %v566_v16  ;;  %v560_v40 = vld [vmem:[#allocation11 + $0x30] sm:$0xff]  ;;  %v575_v41 = vld [vmem:[#allocation11 + $0xa8] sm:$0xff] }
 0x262   :  { %1062 = vmatprep.subr.mxu0 %v581_v17  ;;  %v1015_v17 = vld [vmem:[%s1818_s3] ss:$0 sm:$0xff] }
 0x263   :  { %v393_v45 = vadd.f32 %v392_v43, %v390_v42  ;;  %1063 = vmatpush3.msra.mxu0 %v565_v19  ;;  %v591_v42 = vld [vmem:[#allocation11 + $0x128] sm:$0xff] }
 0x264   :  { %1064 = vmatprep.subr.mxu0 %v580_v20  ;;  %v559_v43 = vld [vmem:[#allocation11 + $0x28] sm:$0xff] }
 0x265   :  { %v394_v46 = vadd.f32 %v393_v45, %v391_v44  ;;  %1065 = vmatpush3.msra.mxu0 %v564_v22  ;;  %v574_v44 = vld [vmem:[#allocation11 + $0xa0] sm:$0xff] }
 0x266   :  { %1066 = vmatprep.subr.mxu0 %v579_v23  ;;  %v590_v45 = vld [vmem:[#allocation11 + $0x120] sm:$0xff] }
 0x267   :  { %v395_v47 = vrot.slane %v394_v46, 4  ;;  %1067 = vmatpush3.msra.mxu0 %v563_v26  ;;  %v1016_v22 = vld [vmem:[%s1819_s4] ss:$0 sm:$0xff] }
 0x268   :  { %1068 = vmatprep.subr.mxu0 %v578_v27 }
 0x269   :  { %v396_v48 = vadd.f32 %v395_v47, %v394_v46  ;;  %1069 = vmatpush3.msra.mxu0 %v562_v29  ;;  %v558_v46 = vld [vmem:[#allocation11 + $0x20] sm:$0xff]  ;;  %v573_v47 = vld [vmem:[#allocation11 + $0x98] sm:$0xff] }
 0x26a   :  { %1070 = vmatprep.subr.mxu0 %v577_v30 }
 0x26b   :  { %v397_v49 = vrot.slane %v396_v48, 2  ;;  %1071 = vmatpush3.msra.mxu0 %v561_v33 }
 0x26c   :  { %1072 = vmatprep.subr.mxu0 %v576_v34 }
 0x26d   :  { %v398_v50 = vadd.f32 %v397_v49, %v396_v48  ;;  %1073 = vmatpush3.msra.mxu0 %v560_v40  ;;  %v589_v48 = vld [vmem:[#allocation11 + $0x118] sm:$0xff] }
 0x26e   :  { %1074 = vmatprep.subr.mxu0 %v575_v41  ;;  %v557_v49 = vld [vmem:[#allocation11 + $0x18] sm:$0xff] }
 0x26f   :  { %v399_v51 = vrot.slane %v398_v50, 1  ;;  %1075 = vmatpush3.msra.mxu0 %v559_v43 }
 0x270   :  { %1076 = vmatprep.subr.mxu0 %v574_v44 }
 0x271   :  { %v400_v52 = vadd.f32 %v399_v51, %v398_v50  ;;  %1077 = vmatpush3.msra.mxu0 %v558_v46  ;;  %v572_v50 = vld [vmem:[#allocation11 + $0x90] sm:$0xff] }
 0x272   :  { %1078 = vmatprep.subr.mxu0 %v573_v47  ;;  %v588_v51 = vld [vmem:[#allocation11 + $0x110] sm:$0xff] }
 0x273   :  { %1220 = vmatmul.mubr.f32.vlgmr.msra.gmra.mxu1 %v400_v52  ;;  %1079 = vmatpush3.msra.mxu0 %v557_v49  ;;  %v556_v52 = vld [vmem:[#allocation11 + $0x10] sm:$0xff] }
 0x274   :  { %1223 = vmatpush3.msra.mxu1 %v601_v6  ;;  %1080 = vmatprep.subr.mxu0 %v572_v50  ;;  %v587_v6 = vld [vmem:[#allocation11 + $0x108] sm:$0xff] }
 0x275   :  { %1224 = vmatprep.subr.mxu1 %v600_v9  ;;  %1081 = vmatpush3.msra.mxu0 %v556_v52 }
 0x276   :  { %1225 = vmatpush3.msra.mxu1 %v600_v9  ;;  %1082 = vmatprep.subr.mxu0 %v571_v53  ;;  %v586_v9 = vld [vmem:[#allocation11 + $0x100] sm:$0xff] }
 0x277   :  { %1226 = vmatprep.subr.mxu1 %v599_v12  ;;  %1083 = vmatpush3.msra.mxu0 %v555_v7 }
 0x278   :  { %1227 = vmatpush3.msra.mxu1 %v599_v12  ;;  %1084 = vmatprep.subr.mxu0 %v570_v8 }
 0x279   :  { %1228 = vmatprep.subr.mxu1 %v598_v15  ;;  %1085 = vmatpush3.msra.mxu0 %v554_v10 }
 0x27a   :  { %1229 = vmatpush3.msra.mxu1 %v598_v15  ;;  %1260 = vmatprep.subr.mxu0 %v1458_v0 }
 0x27b   :  { %1230 = vmatprep.subr.mxu1 %v597_v18 }
 0x27c   :  { %1231 = vmatpush3.msra.mxu1 %v597_v18 }
 0x27d   :  { %1232 = vmatprep.subr.mxu1 %v596_v21 }
 0x27e   :  { %1233 = vmatpush3.msra.mxu1 %v596_v21 }
 0x27f   :  { %1234 = vmatprep.subr.mxu1 %v595_v24 }
 0x280   :  { %1235 = vmatpush3.msra.mxu1 %v595_v24 }
 0x281   :  { %1236 = vmatprep.subr.mxu1 %v594_v28 }
 0x282   :  { %1237 = vmatpush3.msra.mxu1 %v594_v28 }
 0x283   :  { %1238 = vmatprep.subr.mxu1 %v593_v32 }
 0x284   :  { %1239 = vmatpush3.msra.mxu1 %v593_v32 }
 0x285   :  { %1240 = vmatprep.subr.mxu1 %v592_v35 }
 0x286   :  { %1241 = vmatpush3.msra.mxu1 %v592_v35 }
 0x287   :  { %1242 = vmatprep.subr.mxu1 %v591_v42 }
 0x288   :  { %1243 = vmatpush3.msra.mxu1 %v591_v42 }
 0x289   :  { %1244 = vmatprep.subr.mxu1 %v590_v45 }
 0x28a   :  { %1245 = vmatpush3.msra.mxu1 %v590_v45 }
 0x28b   :  { %1246 = vmatprep.subr.mxu1 %v589_v48 }
 0x28c   :  { %1247 = vmatpush3.msra.mxu1 %v589_v48 }
 0x28d   :  { %1248 = vmatprep.subr.mxu1 %v588_v51 }
 0x28e   :  { %1249 = vmatpush3.msra.mxu1 %v588_v51 }
 0x28f   :  { %1250 = vmatprep.subr.mxu1 %v587_v6 }
 0x290   :  { %1251 = vmatpush3.msra.mxu1 %v587_v6 }
 0x291   :  { %1252 = vmatprep.subr.mxu1 %v586_v9 }
 0x292   :  { %1253 = vmatpush3.msra.mxu1 %v586_v9 }
 0x293   :  { %1295 = vmatprep.subr.mxu1 %v1458_v0 }
 0x333   :  { %v467_v11 = vpop.f32.mrf.mxu1 }
 0x334   :  { %v471_v12 = vmul.f32 0.001953125, %v467_v11 }
 0x335   :  { %v1221_v13 = vpop.f32.mrf.mxu1 }
 0x336   :  { %v472_v14 = vadd.f32 1e-05, %v471_v12 }
 0x338   :  { %1340 = vrsqrt.f32 %v472_v14 }
 0x345   :  { %v1341_v15 = vpop.eup %1340 }
 0x346   :  { %v477_v16 = vrot.slane %v1341_v15, %v1700_v31 }
 0x348   :  { %v478_v18 = vmul.f32 %v477_v16, %v1703_v36  ;;  %v479_v19 = vmul.f32 %v477_v16, %v1705_v37  ;;  %v480_v20 = vmul.f32 %v477_v16, %v1707_v38  ;;  %v481_v21 = vmul.f32 %v477_v16, %v1709_v39 }
 0x34a   :  { %v489_v23 = vmul.f32 %v1015_v17, %v478_v18  ;;  %v490_v24 = vmul.f32 %v1015_v17, %v479_v19  ;;  %v491_v26 = vmul.f32 %v1015_v17, %v480_v20  ;;  %v492_v27 = vmul.f32 %v1015_v17, %v481_v21 }
 0x34c   :  { %v500_v28 = vadd.f32 %v1016_v22, %v489_v23  ;;  %v501_v29 = vadd.f32 %v1016_v22, %v490_v24  ;;  %v502_v30 = vadd.f32 %v1016_v22, %v491_v26  ;;  %v503_v32 = vadd.f32 %v1016_v22, %v492_v27 }
 0x34e   :  { %v504_v33 = vmax.f32 %v500_v28, 0.0  ;;  %v505_v36 = vmax.f32 %v501_v29, 0.0  ;;  %v506_v34 = vmax.f32 %v502_v30, 0.0  ;;  %v507_v37 = vmax.f32 %v503_v32, 0.0 }
 0x350   :  { %514 = vst [vmem:[#allocation4 + $0x1] sm:$0xff] %v504_v33  ;;  %515 = vst [vmem:[#allocation4 + $0x9] sm:$0xff] %v505_v36  ;;  %673 = vmatprep.mubr.f32.mxu0 %v504_v33 }
 0x351   :  { %516 = vst [vmem:[#allocation4 + $0x19] sm:$0xff] %v506_v34  ;;  %517 = vst [vmem:[#allocation4 + $0x21] sm:$0xff] %v507_v37 }
 0x357   :  { %v534_v38 = vld [vmem:[#allocation4 + $0x2] sm:$0xff]  ;;  %v535_v35 = vld [vmem:[#allocation4 + $0xa] sm:$0xff] }
 0x358   :  { %v518_v39 = vld [vmem:[#allocation4] sm:$0xff]  ;;  %1254 = vmatprep.mubr.f32.mxu1 %v534_v38  ;;  %v519_v41 = vld [vmem:[#allocation4 + $0x8] sm:$0xff]  ;;  %v520_v43 = vld [vmem:[#allocation4 + $0x18] sm:$0xff] }
 0x359   :  { %674 = vmatmul.mubr.f32.vlgmr.msra.gmra.mxu0 %v518_v39  ;;  %1255 = vmatmul.mubr.f32.vlgmr.msra.gmra.mxu1 %v535_v35  ;;  %v536_v40 = vld [vmem:[#allocation4 + $0x1a] sm:$0xff]  ;;  %v537_v42 = vld [vmem:[#allocation4 + $0x22] sm:$0xff] }
 0x35a   :  { %678 = vmatprep.mubr.f32.mxu0 %v505_v36  ;;  %1257 = vmatprep.mubr.f32.mxu1 %v536_v40 }
 0x35b   :  { %1261 = vmatpush3.msra.mxu0 %v1577_v25  ;;  %1296 = vmatpush3.msra.mxu1 %v1577_v25  ;;  %v521_v25 = vld [vmem:[#allocation4 + $0x20] sm:$0xff] }
 0x35c   :  { %1262 = vmatprep.subr.mxu0 %v1458_v0  ;;  %1297 = vmatprep.subr.mxu1 %v1458_v0 }
 0x35d   :  { %679 = vmatmul.mubr.f32.gmra.mxu0 %v519_v41  ;;  %1258 = vmatmul.mubr.f32.gmra.mxu1 %v537_v42 }
 0x35e   :  { %683 = vmatprep.mubr.f32.mxu0 %v506_v34  ;;  %1263 = vmatpush3.msra.mxu0 %v1602_v54 }
 0x35f   :  { %1298 = vmatpush3.msra.mxu1 %v1602_v54  ;;  %1264 = vmatprep.subr.mxu0 %v1458_v0 }
 0x360   :  { %1299 = vmatprep.subr.mxu1 %v1458_v0  ;;  %1265 = vmatpush3.msra.mxu0 %v1606_v55 }
 0x361   :  { %684 = vmatmul.mubr.f32.gmra.mxu0 %v520_v43  ;;  %1300 = vmatpush3.msra.mxu1 %v1606_v55  ;;  %v1018_v43 = vld [vmem:[%s1822_s7] ss:$0 sm:$0xff]  ;;  %s1424_s7 = scalar_lea.vmem %s997_s23, 512 }
 0x362   :  { %688 = vmatprep.mubr.f32.mxu0 %v507_v37  ;;  %1266 = vmatprep.subr.mxu0 %v1458_v0  ;;  %p1425_p6 = scmp.ne.s32.totalorder %s997_s23, %s1424_s7  ;;  %p1430_p8 = scmp.lt.s32.totalorder %s1424_s7, %s1424_s7 }
 0x363   :  { %1301 = vmatprep.subr.mxu1 %v1458_v0  ;;  %1267 = vmatpush3.msra.mxu0 %v1610_v56 }
 0x364   :  { %1302 = vmatpush3.msra.mxu1 %v1610_v56  ;;  %1268 = vmatprep.subr.mxu0 %v1458_v0  ;;  %p1431_p9 = por %p1430_p8, %p1429_p7 }
 0x365   :  { %689 = vmatmul.mubr.f32.gmra.mxu0 %v521_v25  ;;  %1303 = vmatprep.subr.mxu1 %v1458_v0 }
 0x366   :  { %1269 = vmatpush3.msra.mxu0 %v1614_v57  ;;  %1292 = vmatprep.mubr.msk.f32.mxu0 %vm1460_vm3, %v1458_v0  ;;  %p1432_p10 = pnand %p1431_p9, %p1425_p6 }
 0x367   :  { %1270 = vmatprep.subr.mxu0 %v1458_v0  ;;  %1304 = vmatpush3.msra.mxu1 %v1614_v57 }
 0x368   :  { %1271 = vmatpush3.msra.mxu0 %v1618_v58  ;;  %1305 = vmatprep.subr.mxu1 %v1458_v0 }
 0x369   :  { %1272 = vmatprep.subr.mxu0 %v1458_v0  ;;  %1306 = vmatpush3.msra.mxu1 %v1618_v58 }
 0x36a   :  { %1273 = vmatpush3.msra.mxu0 %v1622_v59  ;;  %1307 = vmatprep.subr.mxu1 %v1458_v0 }
 0x36b   :  { %1274 = vmatprep.subr.mxu0 %v1458_v0  ;;  %1308 = vmatpush3.msra.mxu1 %v1622_v59 }
 0x36c   :  { %1275 = vmatpush3.msra.mxu0 %v1626_v60  ;;  %1309 = vmatprep.subr.mxu1 %v1458_v0 }
 0x36d   :  { %1276 = vmatprep.subr.mxu0 %v1458_v0  ;;  %1310 = vmatpush3.msra.mxu1 %v1626_v60 }
 0x36e   :  { %1277 = vmatpush3.msra.mxu0 %v1630_v61  ;;  %1311 = vmatprep.subr.mxu1 %v1458_v0 }
 0x36f   :  { %1278 = vmatprep.subr.mxu0 %v1458_v0  ;;  %1312 = vmatpush3.msra.mxu1 %v1630_v61 }
 0x370   :  { %1279 = vmatpush3.msra.mxu0 %v1634_v62  ;;  %1313 = vmatprep.subr.mxu1 %v1458_v0 }
 0x371   :  { %1280 = vmatprep.subr.mxu0 %v1458_v0  ;;  %1314 = vmatpush3.msra.mxu1 %v1634_v62  ;;  %v1017_v62 = vld [vmem:[%s1821_s6] ss:$0 sm:$0xff] }
 0x372   :  { %1281 = vmatpush3.msra.mxu0 %v1638_v63  ;;  %1315 = vmatprep.subr.mxu1 %v1458_v0 }
 0x373   :  { %1282 = vmatprep.subr.mxu0 %v1458_v0  ;;  %1316 = vmatpush3.msra.mxu1 %v1638_v63 }
 0x374   :  { %1283 = vmatpush3.msra.mxu0 %v1642_v1  ;;  %1317 = vmatprep.subr.mxu1 %v1458_v0 }
 0x375   :  { %1284 = vmatprep.subr.mxu0 %v1458_v0  ;;  %1318 = vmatpush3.msra.mxu1 %v1642_v1 }
 0x376   :  { %1285 = vmatpush3.msra.mxu0 %v1646_v2  ;;  %1319 = vmatprep.subr.mxu1 %v1458_v0 }
 0x377   :  { %1286 = vmatprep.subr.mxu0 %v1458_v0  ;;  %1320 = vmatpush3.msra.mxu1 %v1646_v2 }
 0x378   :  { %1287 = vmatpush3.msra.mxu0 %v1648_v3  ;;  %1321 = vmatprep.subr.mxu1 %v1458_v0 }
 0x379   :  { %1288 = vmatprep.subr.mxu0 %v1458_v0  ;;  %1322 = vmatpush3.msra.mxu1 %v1648_v3 }
 0x37a   :  { %1289 = vmatpush3.msra.mxu0 %v1654_v4  ;;  %1323 = vmatprep.subr.mxu1 %v1458_v0 }
 0x37b   :  { %1290 = vmatprep.subr.mxu0 %v1458_v0  ;;  %1324 = vmatpush3.msra.mxu1 %v1654_v4 }
 0x37c   :  { %1291 = vmatpush3.msra.mxu0 %v1658_v5  ;;  %1325 = vmatprep.subr.mxu1 %v1458_v0 }
 0x37d   :  { %1327 = vmatprep.mubr.msk.f32.mxu1 %vm1460_vm3, %v1458_v0  ;;  %1326 = vmatpush3.msra.mxu1 %v1658_v5 }
 0x419   :  { %v1086_v54 = vpop.f32.mrf.mxu0  ;;  %v1256_v55 = vpop.f32.mrf.mxu1 }
 0x41b   :  { %v1087_v56 = vpop.f32.mrf.mxu0  ;;  %v760_v58 = vpop.f32.mrf.mxu1 }
 0x41c   :  { %v1088_v60 = vadd.f32 %v1087_v56, %v1086_v54 }
 0x41d   :  { %v1089_v57 = vpop.f32.mrf.mxu0  ;;  %v1259_v2 = vpop.f32.mrf.mxu1 }
 0x41e   :  { %v676_v4 = vadd.f32 %v1088_v60, %v1017_v62 }
 0x41f   :  { %v1090_v59 = vpop.f32.mrf.mxu0  ;;  %v770_v46 = vpop.f32.mrf.mxu1 }
 0x420   :  { %v1091_v61 = vadd.f32 %v1090_v59, %v1089_v57  ;;  %v761_v48 = vadd.f32 %v760_v58, %v676_v4  ;;  %v1019_v57 = vld [vmem:[%s1823_s8] ss:$0 sm:$0xff] }
 0x421   :  { %v1092_v63 = vpop.f32.mrf.mxu0 }
 0x422   :  { %v681_v1 = vadd.f32 %v1091_v61, %v1017_v62 }
 0x423   :  { %v1093_v3 = vpop.f32.mrf.mxu0 }
 0x424   :  { %v1094_v0 = vadd.f32 %v1093_v3, %v1092_v63  ;;  %v766_v5 = vadd.f32 %v1256_v55, %v681_v1 }
 0x425   :  { %v1095_v44 = vpop.f32.mrf.mxu0 }
 0x426   :  { %v686_v45 = vadd.f32 %v1094_v0, %v1017_v62  ;;  %v779_v51 = vadd.f32 %v766_v5, %v761_v48 }
 0x427   :  { %v1096_v47 = vpop.f32.mrf.mxu0 }
 0x428   :  { %v771_v49 = vadd.f32 %v770_v46, %v686_v45  ;;  %v1097_v50 = vadd.f32 %v1096_v47, %v1095_v44 }
 0x42a   :  { %v691_v52 = vadd.f32 %v1097_v50, %v1017_v62  ;;  %v780_v53 = vadd.f32 %v779_v51, %v771_v49 }
 0x42c   :  { %v776_v6 = vadd.f32 %v1259_v2, %v691_v52 }
 0x42e   :  { %v781_v7 = vadd.f32 %v780_v53, %v776_v6 }
 0x430   :  { %v782_v8 = vrot.slane %v781_v7, 4 }
 0x432   :  { %v783_v9 = vadd.f32 %v782_v8, %v781_v7 }
 0x434   :  { %v784_v10 = vrot.slane %v783_v9, 2 }
 0x436   :  { %v785_v11 = vadd.f32 %v784_v10, %v783_v9 }
 0x438   :  { %v786_v12 = vrot.slane %v785_v11, 1 }
 0x43a   :  { %v787_v13 = vadd.f32 %v786_v12, %v785_v11 }
 0x43c   :  { %1293 = vmatmul.mubr.f32.vlgmr.msra.gmra.mxu0 %v787_v13 }
 0x4fc   :  { %v854_v14 = vpop.f32.mrf.mxu0 }
 0x4fd   :  { %v858_v15 = vmul.f32 0.001953125, %v854_v14 }
 0x4fe   :  { %v1294_v16 = vpop.f32.mrf.mxu0 }
 0x4ff   :  { %v862_v17 = vrot.slane %v858_v15, %v1700_v31 }
 0x501   :  { %v863_v18 = vsub.f32 %v761_v48, %v862_v17  ;;  %v864_v19 = vsub.f32 %v766_v5, %v862_v17  ;;  %v865_v20 = vsub.f32 %v771_v49, %v862_v17  ;;  %v866_v21 = vsub.f32 %v776_v6, %v862_v17 }
 0x503   :  { %v867_v22 = vmul.f32 %v863_v18, %v863_v18  ;;  %v868_v23 = vmul.f32 %v864_v19, %v864_v19  ;;  %v869_v24 = vmul.f32 %v865_v20, %v865_v20  ;;  %v870_v27 = vmul.f32 %v866_v21, %v866_v21 }
 0x505   :  { %v871_v26 = vadd.f32 %v868_v23, %v867_v22 }
 0x507   :  { %v872_v28 = vadd.f32 %v871_v26, %v869_v24 }
 0x509   :  { %v873_v29 = vadd.f32 %v872_v28, %v870_v27 }
 0x50b   :  { %v874_v30 = vrot.slane %v873_v29, 4 }
 0x50d   :  { %v875_v32 = vadd.f32 %v874_v30, %v873_v29 }
 0x50f   :  { %v876_v33 = vrot.slane %v875_v32, 2 }
 0x511   :  { %v877_v36 = vadd.f32 %v876_v33, %v875_v32 }
 0x513   :  { %v878_v34 = vrot.slane %v877_v36, 1 }
 0x515   :  { %v879_v37 = vadd.f32 %v878_v34, %v877_v36 }
 0x517   :  { %1328 = vmatmul.mubr.f32.vlgmr.msra.gmra.mxu1 %v879_v37 }
 0x5d7   :  { %v946_v38 = vpop.f32.mrf.mxu1 }
 0x5d8   :  { %v950_v39 = vmul.f32 0.001953125, %v946_v38 }
 0x5d9   :  { %v1329_v35 = vpop.f32.mrf.mxu1 }
 0x5da   :  { %v951_v40 = vadd.f32 1e-05, %v950_v39 }
 0x5dc   :  { %1342 = vrsqrt.f32 %v951_v40 }
 0x5e9   :  { %v1343_v41 = vpop.eup %1342 }
 0x5ea   :  { %v956_v42 = vrot.slane %v1343_v41, %v1700_v31 }
 0x5ec   :  { %v957_v25 = vmul.f32 %v956_v42, %v863_v18  ;;  %v958_v54 = vmul.f32 %v956_v42, %v864_v19  ;;  %v959_v55 = vmul.f32 %v956_v42, %v865_v20  ;;  %v960_v56 = vmul.f32 %v956_v42, %v866_v21 }
 0x5ee   :  { %v968_v58 = vmul.f32 %v1018_v43, %v957_v25  ;;  %v969_v59 = vmul.f32 %v1018_v43, %v958_v54  ;;  %v970_v60 = vmul.f32 %v1018_v43, %v959_v55  ;;  %v971_v61 = vmul.f32 %v1018_v43, %v960_v56 }
 0x5f0   :  { %v979_v62 = vadd.f32 %v1019_v57, %v968_v58  ;;  %v980_v31 = vadd.f32 %v1019_v57, %v969_v59  ;;  %v981_v63 = vadd.f32 %v1019_v57, %v970_v60  ;;  %v982_v1 = vadd.f32 %v1019_v57, %v971_v61 }
 0x5f2   :  { %v983_v2 = vmax.f32 %v979_v62, 0.0  ;;  %v984_v3 = vmax.f32 %v980_v31, 0.0  ;;  %v985_v4 = vmax.f32 %v981_v63, 0.0  ;;  %v986_v0 = vmax.f32 %v982_v1, 0.0 }
 0x5f4   :  { %987 = vst [vmem:[#allocation14] sm:$0xff] %v983_v2  ;;  %988 = vst [vmem:[#allocation14 + $0x8] sm:$0xff] %v984_v3 }
 0x5f5   :  { %989 = vst [vmem:[#allocation14 + $0x10] sm:$0xff] %v985_v4  ;;  %990 = vst [vmem:[#allocation14 + $0x18] sm:$0xff] %v986_v0 }
 0x5f6   :  { %1435 = shalt.err (!%p1432_p10)
}
 0x5f7   :  { %1002 = dma.vmem_to_hbm [thread:$0]  %s997_s23, 512, %s1825_s10, [#allocation8], %s1454_s18, %s1454_s18, %s1455_s19  }
 0x5f8   :  { %1450 = dma.done.wait [#allocation8], 512  }
 0x5f9   :  { %1451 = vsyncadd [#allocation8], 4294966784 }
 0x5fa   :  { %1006 = vsyncpa [#allocation7], 1 }
 0x5fb   :  { %1007 = vsyncpa [#allocation10], 1 }
 0x5fc   :  { %1008 = vsyncpa [#allocation13], 1 }
 0x5fd   :  { %1009 = vsyncpa [#allocation8], 1 }

</bundles_post_ra>
